<compile_context>
chip_gen: v5e
topology: v5e:2x2
jax: 0.10.0
libtpu: 0.0.40
codegen_flags: <defaults>
</compile_context>

<pallas_src>
import functools

import jax
import jax.numpy as jnp
from jax.experimental import pallas as pl
from jax.experimental.pallas import tpu as pltpu

_LANE = 128
_A_MAX_HW = 8192            # full-hw-block path used when H*W <= this
_LIVE_F32_BYTES = 256 * 1024  # target live f32 working set (~64 vregs) per row sub-tile


def _round_up(x, m):
    return ((x + m - 1) // m) * m


def _vmem_capacity_bytes():
    try:
        info = pltpu.get_tpu_info()
        cap = getattr(info, "vmem_capacity_bytes", None)
        if cap:
            return int(cap)
    except Exception:
        pass
    return 64 * 1024 * 1024   # conservative default (v7x per-TensorCore VMEM)


# ---------------------------------------------------------------------------
# Path A: H*W small enough that one block spans the full spatial axis.
#   * block = (tr, hw); hw == full array dim -> no lane padding, no ragged tail.
#   * reduction done per row sub-tile of `rsub` rows so live values stay small.
# ---------------------------------------------------------------------------
def _gap_full_kernel(x_ref, o_ref, *, rsub, n_rsub, inv_hw):
    for r in range(n_rsub):               # static, fully unrolled, static slices
        lo = r * rsub
        s = jnp.sum(x_ref[lo:lo + rsub, :].astype(jnp.float32), axis=1, keepdims=True)
        o_ref[lo:lo + rsub, :] = (s * inv_hw).astype(o_ref.dtype)


# ---------------------------------------------------------------------------
# Path B: huge H*W -> spatial axis tiled into lane-aligned chunks (grid axis 1,
# last, "arbitrary"); partial sums accumulated into an f32 VMEM scratch.  The
# ragged spatial tail is masked in-kernel (no wrapper padding of the tensor).
# ---------------------------------------------------------------------------
def _gap_chunked_kernel(x_ref, o_ref, acc_ref, *, hw, hw_chunk, n_lane_chunks, inv_hw):
    k = pl.program_id(1)

    @pl.when(k == 0)
    def _():
        acc_ref[...] = jnp.zeros_like(acc_ref)

    lane = jax.lax.broadcasted_iota(jnp.int32, acc_ref.shape, 1)   # hoisted, (tr, 128)
    base = k * hw_chunk
    for j in range(n_lane_chunks):
        chunk = x_ref[:, j * _LANE:(j + 1) * _LANE].astype(jnp.float32)
        limit = hw - (base + j * _LANE)        # columns >= hw hold garbage -> zero them
        acc_ref[...] += jnp.where(lane < limit, chunk, 0.0)

    @pl.when(k == pl.num_programs(1) - 1)
    def _():
        s = jnp.sum(acc_ref[...], axis=1, keepdims=True)   # one XLU reduce per row tile
        o_ref[...] = (s * inv_hw).astype(o_ref.dtype)


def global_avg_pool(x):
    """x: (N, C, H, W) -> (N, C); mean over spatial dims (== torch.mean(x, dim=[2,3]))."""
    N, C, H, W = x.shape
    rows, hw = N * C, H * W
    itemsize = jnp.dtype(x.dtype).itemsize
    inv_hw = 1.0 / float(hw)

    big_vmem = _vmem_capacity_bytes() >= 128 * 1024 * 1024
    per_buf_budget = (8 if big_vmem else 4) * 1024 * 1024
    vmem_limit = (64 if big_vmem else 40) * 1024 * 1024

    sub = 8 * max(1, 4 // itemsize)            # sublane multiple (f32:8, bf16:16, i8:32)
    rows_ceil = _round_up(rows, sub)
    hw_pad = _round_up(hw, _LANE)              # lane-padded per-row VMEM footprint
    x2d = x.reshape(rows, hw)                  # free reshape, NO wrapper-side padding

    if hw <= _A_MAX_HW:
        # ---------------- Path A: full-hw blocks, 1-D grid over rows ----------------
        tr = max(sub, (per_buf_budget // (hw_pad * itemsize)) // sub * sub)
        tr = min(tr, rows_ceil)
        # give the "parallel" row axis >= 2 tiles so v7x megacore can split it
        if tr >= rows and rows_ceil >= 2 * sub:
            tr = _round_up(rows_ceil // 2, sub)
        rsub = max(sub, (_LIVE_F32_BYTES // (hw_pad * 4)) // sub * sub)
        rsub = min(rsub, tr)
        tr = max(rsub, (tr // rsub) * rsub)    # tr a multiple of rsub
        tr = min(tr, 64 * rsub)                # bound unroll length
        n_rsub = tr // rsub
        n_row_tiles = pl.cdiv(rows, tr)

        kernel = functools.partial(_gap_full_kernel, rsub=rsub, n_rsub=n_rsub, inv_hw=inv_hw)
        out = pl.pallas_call(
            kernel,
            out_shape=jax.ShapeDtypeStruct((rows, 1), x.dtype),
            grid_spec=pltpu.PrefetchScalarGridSpec(
                num_scalar_prefetch=0,
                grid=(n_row_tiles,),
                in_specs=[pl.BlockSpec((tr, hw), lambda i: (i, 0))],
                out_specs=pl.BlockSpec((tr, 1), lambda i: (i, 0)),
            ),
            compiler_params=pltpu.CompilerParams(
                dimension_semantics=("parallel",),
                vmem_limit_bytes=vmem_limit,
            ),
        )(x2d)
    else:
        # ---------------- Path B: huge hw; chunk the spatial axis -------------------
        max_chunk = 32 * _LANE                                   # <= 4096 lanes per step
        n_target = pl.cdiv(hw, max_chunk)
        hw_chunk = min(max_chunk, _round_up(pl.cdiv(hw, n_target), _LANE))
        n_lane_chunks = hw_chunk // _LANE
        n_hw_chunks = pl.cdiv(hw, hw_chunk)

        tr = max(sub, (per_buf_budget // (hw_chunk * itemsize)) // sub * sub)
        tr = min(tr, rows_ceil)
        if tr >= rows and rows_ceil >= 2 * sub:
            tr = _round_up(rows_ceil // 2, sub)
        n_row_tiles = pl.cdiv(rows, tr)

        kernel = functools.partial(
            _gap_chunked_kernel, hw=hw, hw_chunk=hw_chunk,
            n_lane_chunks=n_lane_chunks, inv_hw=inv_hw)
        out = pl.pallas_call(
            kernel,
            out_shape=jax.ShapeDtypeStruct((rows, 1), x.dtype),
            grid_spec=pltpu.PrefetchScalarGridSpec(
                num_scalar_prefetch=0,
                grid=(n_row_tiles, n_hw_chunks),
                in_specs=[pl.BlockSpec((tr, hw_chunk), lambda i, k: (i, k))],
                out_specs=pl.BlockSpec((tr, 1), lambda i, k: (i, 0)),
                scratch_shapes=[pltpu.VMEM((tr, _LANE), jnp.float32)],
            ),
            compiler_params=pltpu.CompilerParams(
                dimension_semantics=("parallel", "arbitrary"),
                vmem_limit_bytes=vmem_limit,
            ),
        )(x2d)

    return out[:, 0].reshape(N, C)


if __name__ == "__main__":
    key = jax.random.PRNGKey(0)
    x = jax.random.normal(key, (2, 4, 16, 16), dtype=jnp.float32)

    y = global_avg_pool(x)
    jax.block_until_ready(y)

    # sanity check against plain JAX reference
    y_ref = jnp.mean(x, axis=(2, 3))
    assert y.shape == (2, 4)
    assert jnp.allclose(y, y_ref, atol=1e-5, rtol=1e-5)

    print("KERNEL_OK")
</pallas_src>

<mosaic_0001>
module attributes {stable_mosaic.version = 11 : i64} {
  func.func @_gap_full_kernel(%arg0: i32, %arg1: memref<8x256xf32, #tpu.memory_space<vmem>>, %arg2: memref<8x1xf32, #tpu.memory_space<vmem>>) attributes {dimension_semantics = [#tpu.dimension_semantics<parallel>], iteration_bounds = array<i64: 1>, scalar_prefetch = 0 : i64, scratch_operands = 0 : i64, tpu.core_type = #tpu.core_type<tc>, window_params = [{transform_indices = @transform_0, window_bounds = array<i64: 8, 256>}, {transform_indices = @transform_1, window_bounds = array<i64: 8, 1>}]} {
    %c0 = arith.constant 0 : index
    %c0_0 = arith.constant 0 : index
    %0 = vector.load %arg1[%c0, %c0_0] : memref<8x256xf32, #tpu.memory_space<vmem>>, vector<8x256xf32>
    %cst = arith.constant dense<0.000000e+00> : vector<8xf32>
    %1 = vector.multi_reduction <add>, %0, %cst [1] : vector<8x256xf32> to vector<8xf32>
    %2 = vector.shape_cast %1 : vector<8xf32> to vector<8x1xf32>
    %cst_1 = arith.constant 3.906250e-03 : f32
    %3 = vector.broadcast %cst_1 : f32 to vector<8x1xf32>
    %4 = arith.mulf %2, %3 : vector<8x1xf32>
    %c0_2 = arith.constant 0 : index
    %c0_3 = arith.constant 0 : index
    %5 = vector.load %arg2[%c0_2, %c0_3] : memref<8x1xf32, #tpu.memory_space<vmem>>, vector<8x1xf32>
    tpu.vector_store %arg2[%c0_2, %c0_3], %4 {strides = array<i32>} : memref<8x1xf32, #tpu.memory_space<vmem>>, vector<8x1xf32>,
    return
  }
  func.func @transform_0(%arg0: i32) -> (i32, i32) {
    %c0_i32 = arith.constant 0 : i32
    %c0_i32_0 = arith.constant 0 : i32
    return %arg0, %c0_i32 : i32, i32
  }
  func.func @transform_1(%arg0: i32) -> (i32, i32) {
    %c0_i32 = arith.constant 0 : i32
    %c0_i32_0 = arith.constant 0 : i32
    return %arg0, %c0_i32 : i32, i32
  }
}

</mosaic_0001>

<bundles_post_ra>
// kernel: tpu_custom_call.1
= control target key start
LH: loop header
LB: loop body
LE: loop exit
PB: predicated region body
PF: predicated region fallthrough
CT: control target
= control target key end

     0   :  { %6 = vsyncpa [#allocation3], 0  ;;  %s62_s9 = smov [#allocation2]   ;;  %s79_s0 = inlined_call_operand.hbm [shape: f32[8,256], index: 0, kind: input, shape index: {}]   ;;  %s80_s1 = inlined_call_operand.vmem [shape: f32[8,1], index: 1, kind: output, shape index: {}]  }
   0x1   :  { %s12_s8 = sshll.u32 %s79_s0, 4  ;;  %s14_s10 = sshll.u32 %s62_s9, 4  ;;  %s13_s8 = int_to_ptr.hbm [resolvable:$true] %s12_s8  ;;  %s15_s10 = int_to_ptr.vmem [resolvable:$true] %s14_s10 }
   0x2   :  { %17 = dma.hbm_to_vmem [thread:$0]  %s13_s8, 256, %s15_s10, [#allocation3]  }
   0x3   :  { %60 = dma.done.wait [#allocation3], 256  }
   0x4   :  { %61 = vsyncadd [#allocation3], 4294967040  ;;  %v22_v0 = vld [vmem:[#allocation2] sm:$0xff]  ;;  %v23_v1 = vld [vmem:[#allocation2 + $0x8] sm:$0xff]  ;;  %vm28_vm0 = vcmask 7168  }
   0x5   :  { %v24_v2 = vadd.f32 %v23_v1, %v22_v0 }
   0x7   :  { %25 = vadd.xlane.f32.xlu0 %v24_v2 }
  0x7a   :  { %v26_v3 = vpop.xlane.xlu0 %25 }
  0x7b   :  { %v27_v4 = vmul.f32 0.00390625, %v26_v3 }
  0x7d   :  { %29 = vst.msk [vmem:[%s80_s1] sm:$0xff] %vm28_vm0, %v27_v4 }
  0x7e   :  { %34 = vsyncpa [#allocation3], 1 }

</bundles_post_ra>
